<compile_context>
chip_gen: v6e
topology: v6e:2x2x1
jax: 0.10.0
libtpu: 0.0.40
codegen_flags: <defaults>
</compile_context>

<pallas_src>
import functools
import math

import jax
import jax.numpy as jnp
from jax import lax
from jax.experimental import pallas as pl
from jax.experimental.pallas import tpu as pltpu

BN_EPS = 1e-3
NEF = 256
TM = 256  # M tile; K and N are taken as single full-extent blocks.


# ----------------------------------------------------------------------------
# Pallas kernel: (TM, K) @ (K, N) with fused folded-BN scale/bias (+ ReLU)
# ----------------------------------------------------------------------------
def _mm_kernel(a_ref, b_ref, s_ref, c_ref, o_ref, *, relu):
    y = jnp.dot(a_ref[...], b_ref[...], preferred_element_type=jnp.float32)
    y = y * s_ref[...] + c_ref[...]
    if relu:
        y = jnp.maximum(y, 0.0)
    o_ref[...] = y.astype(o_ref.dtype)


@functools.partial(jax.jit, static_argnames=("relu", "out_dtype"))
def fused_matmul(a, b, scale, bias, relu=False, out_dtype=jnp.bfloat16):
    """(M,K)bf16 @ (K,N)bf16 * scale[1,N] + bias[1,N], optional ReLU.

    Single full-K / full-N block (legal: full-dim blocks bypass the (8,128)
    divisibility rule), 1-D grid over M with a possibly-partial last block.
    """
    M, K = a.shape
    Kb, N = b.shape
    assert K == Kb, (K, Kb)
    tm = TM if M >= TM else M            # full-dim M block when M < TM (e.g. head)
    grid_m = pl.cdiv(M, tm)
    return pl.pallas_call(
        functools.partial(_mm_kernel, relu=relu),
        out_shape=jax.ShapeDtypeStruct((M, N), out_dtype),
        grid_spec=pltpu.PrefetchScalarGridSpec(
            num_scalar_prefetch=0,
            grid=(grid_m,),
            in_specs=[
                pl.BlockSpec((tm, K), lambda i: (i, 0)),   # A: new M-tile each step
                pl.BlockSpec((K, N), lambda i: (0, 0)),    # B: whole weight, fetched once
                pl.BlockSpec((1, N), lambda i: (0, 0)),    # scale
                pl.BlockSpec((1, N), lambda i: (0, 0)),    # bias
            ],
            out_specs=pl.BlockSpec((tm, N), lambda i: (i, 0)),
        ),
        compiler_params=pltpu.CompilerParams(
            dimension_semantics=("parallel",),
            vmem_limit_bytes=32 * 1024 * 1024),
    )(a.astype(jnp.bfloat16), b, scale, bias)


# ----------------------------------------------------------------------------
# Plain-JAX glue: im2col, pooling, resize
# ----------------------------------------------------------------------------
def im2col(x, kh, kw, sh, sw, ph, pw):
    """x: NHWC -> (N*Ho*Wo, kh*kw*C) patches (row order matches HWIO weights)."""
    if ph or pw:
        x = jnp.pad(x, ((0, 0), (ph, ph), (pw, pw), (0, 0)))
    N, H, W, C = x.shape
    Ho = (H - kh) // sh + 1
    Wo = (W - kw) // sw + 1
    cols = []
    for i in range(kh):
        for j in range(kw):
            cols.append(x[:, i:i + sh * (Ho - 1) + 1:sh,
                          j:j + sw * (Wo - 1) + 1:sw, :])
    patches = jnp.concatenate(cols, axis=-1)
    return patches.reshape(N * Ho * Wo, kh * kw * C), (N, Ho, Wo)


def max_pool_3x3_s2(x):
    return lax.reduce_window(x, jnp.asarray(-jnp.inf, x.dtype), lax.max,
                             (1, 3, 3, 1), (1, 2, 2, 1), "VALID")


def avg_pool_3x3_s1_p1(x):
    # PyTorch avg_pool2d default count_include_pad=True -> divide by 9 always.
    s = lax.reduce_window(x, jnp.asarray(0, x.dtype), lax.add,
                          (1, 3, 3, 1), (1, 1, 1, 1),
                          [(0, 0), (1, 1), (1, 1), (0, 0)])
    return s / jnp.asarray(9, x.dtype)


# ----------------------------------------------------------------------------
# Parameters (deterministic, shapes match torchvision Inception-v3)
# ----------------------------------------------------------------------------
class ParamGen:
    def __init__(self, seed):
        self._key = jax.random.PRNGKey(seed)
        self._n = 0

    def next(self):
        self._n += 1
        return jax.random.fold_in(self._key, self._n)


def _pair(v):
    return (v, v) if isinstance(v, int) else tuple(v)


def basic_conv2d(pg, cin, cout, ksize):
    """Conv weight (reshaped to matmul form, bf16) + folded eval-mode BN."""
    kh, kw = _pair(ksize)
    w = jax.random.normal(pg.next(), (kh, kw, cin, cout), jnp.float32) * \
        math.sqrt(2.0 / (kh * kw * cin))
    gamma = 1.0 + 0.1 * jax.random.normal(pg.next(), (cout,), jnp.float32)
    beta = 0.05 * jax.random.normal(pg.next(), (cout,), jnp.float32)
    run_mean = jnp.zeros((cout,), jnp.float32)
    run_var = jnp.ones((cout,), jnp.float32)
    scale = gamma / jnp.sqrt(run_var + BN_EPS)     # folded eval-mode BN
    bias = beta - run_mean * scale
    return dict(w=w.reshape(kh * kw * cin, cout).astype(jnp.bfloat16),
                scale=scale.reshape(1, cout),
                bias=bias.reshape(1, cout))


@functools.partial(jax.jit, static_argnames=("ksize", "stride", "padding", "relu"))
def _conv_impl(w, scale, bias, x, *, ksize, stride, padding, relu):
    kh, kw = ksize
    sh, sw = stride
    ph, pw = padding
    B, H, W, C = x.shape
    if (kh, kw, sh, sw, ph, pw) == (1, 1, 1, 1, 0, 0):
        # 1x1 stride-1 conv: no im2col, just a reshape.
        patches, Ho, Wo = x.reshape(B * H * W, C), H, W
    else:
        patches, (B, Ho, Wo) = im2col(x, kh, kw, sh, sw, ph, pw)
    y = fused_matmul(patches, w, scale, bias, relu=relu)
    return y.reshape(B, Ho, Wo, w.shape[1])


def apply_conv(p, x, ksize=1, stride=1, padding=0, relu=True):
    return _conv_impl(p["w"], p["scale"], p["bias"], x,
                      ksize=_pair(ksize), stride=_pair(stride),
                      padding=_pair(padding), relu=relu)


# --- Inception blocks --------------------------------------------------------
def inception_a(pg, cin, pool_features):
    return dict(
        b1x1=basic_conv2d(pg, cin, 64, 1),
        b5x5_1=basic_conv2d(pg, cin, 48, 1),
        b5x5_2=basic_conv2d(pg, 48, 64, 5),
        b3d_1=basic_conv2d(pg, cin, 64, 1),
        b3d_2=basic_conv2d(pg, 64, 96, 3),
        b3d_3=basic_conv2d(pg, 96, 96, 3),
        bpool=basic_conv2d(pg, cin, pool_features, 1))


def apply_inception_a(p, x):
    b1 = apply_conv(p["b1x1"], x)
    b5 = apply_conv(p["b5x5_1"], x)
    b5 = apply_conv(p["b5x5_2"], b5, ksize=5, padding=2)
    b3 = apply_conv(p["b3d_1"], x)
    b3 = apply_conv(p["b3d_2"], b3, ksize=3, padding=1)
    b3 = apply_conv(p["b3d_3"], b3, ksize=3, padding=1)
    bp = apply_conv(p["bpool"], avg_pool_3x3_s1_p1(x))
    return jnp.concatenate([b1, b5, b3, bp], axis=-1)


def inception_b(pg, cin):
    return dict(
        b3x3=basic_conv2d(pg, cin, 384, 3),
        b3d_1=basic_conv2d(pg, cin, 64, 1),
        b3d_2=basic_conv2d(pg, 64, 96, 3),
        b3d_3=basic_conv2d(pg, 96, 96, 3))


def apply_inception_b(p, x):
    b3 = apply_conv(p["b3x3"], x, ksize=3, stride=2)
    bd = apply_conv(p["b3d_1"], x)
    bd = apply_conv(p["b3d_2"], bd, ksize=3, padding=1)
    bd = apply_conv(p["b3d_3"], bd, ksize=3, stride=2)
    bp = max_pool_3x3_s2(x)
    return jnp.concatenate([b3, bd, bp], axis=-1)


def inception_c(pg, cin, c7):
    return dict(
        b1x1=basic_conv2d(pg, cin, 192, 1),
        b7_1=basic_conv2d(pg, cin, c7, 1),
        b7_2=basic_conv2d(pg, c7, c7, (1, 7)),
        b7_3=basic_conv2d(pg, c7, 192, (7, 1)),
        b7d_1=basic_conv2d(pg, cin, c7, 1),
        b7d_2=basic_conv2d(pg, c7, c7, (7, 1)),
        b7d_3=basic_conv2d(pg, c7, c7, (1, 7)),
        b7d_4=basic_conv2d(pg, c7, c7, (7, 1)),
        b7d_5=basic_conv2d(pg, c7, 192, (1, 7)),
        bpool=basic_conv2d(pg, cin, 192, 1))


def apply_inception_c(p, x):
    b1 = apply_conv(p["b1x1"], x)
    b7 = apply_conv(p["b7_1"], x)
    b7 = apply_conv(p["b7_2"], b7, ksize=(1, 7), padding=(0, 3))
    b7 = apply_conv(p["b7_3"], b7, ksize=(7, 1), padding=(3, 0))
    bd = apply_conv(p["b7d_1"], x)
    bd = apply_conv(p["b7d_2"], bd, ksize=(7, 1), padding=(3, 0))
    bd = apply_conv(p["b7d_3"], bd, ksize=(1, 7), padding=(0, 3))
    bd = apply_conv(p["b7d_4"], bd, ksize=(7, 1), padding=(3, 0))
    bd = apply_conv(p["b7d_5"], bd, ksize=(1, 7), padding=(0, 3))
    bp = apply_conv(p["bpool"], avg_pool_3x3_s1_p1(x))
    return jnp.concatenate([b1, b7, bd, bp], axis=-1)


def inception_d(pg, cin):
    return dict(
        b3_1=basic_conv2d(pg, cin, 192, 1),
        b3_2=basic_conv2d(pg, 192, 320, 3),
        b7_1=basic_conv2d(pg, cin, 192, 1),
        b7_2=basic_conv2d(pg, 192, 192, (1, 7)),
        b7_3=basic_conv2d(pg, 192, 192, (7, 1)),
        b7_4=basic_conv2d(pg, 192, 192, 3))


def apply_inception_d(p, x):
    b3 = apply_conv(p["b3_1"], x)
    b3 = apply_conv(p["b3_2"], b3, ksize=3, stride=2)
    b7 = apply_conv(p["b7_1"], x)
    b7 = apply_conv(p["b7_2"], b7, ksize=(1, 7), padding=(0, 3))
    b7 = apply_conv(p["b7_3"], b7, ksize=(7, 1), padding=(3, 0))
    b7 = apply_conv(p["b7_4"], b7, ksize=3, stride=2)
    bp = max_pool_3x3_s2(x)
    return jnp.concatenate([b3, b7, bp], axis=-1)


def inception_e(pg, cin):
    return dict(
        b1x1=basic_conv2d(pg, cin, 320, 1),
        b3_1=basic_conv2d(pg, cin, 384, 1),
        b3_2a=basic_conv2d(pg, 384, 384, (1, 3)),
        b3_2b=basic_conv2d(pg, 384, 384, (3, 1)),
        bd_1=basic_conv2d(pg, cin, 448, 1),
        bd_2=basic_conv2d(pg, 448, 384, 3),
        bd_3a=basic_conv2d(pg, 384, 384, (1, 3)),
        bd_3b=basic_conv2d(pg, 384, 384, (3, 1)),
        bpool=basic_conv2d(pg, cin, 192, 1))


def apply_inception_e(p, x):
    b1 = apply_conv(p["b1x1"], x)
    x3 = apply_conv(p["b3_1"], x)
    b3 = jnp.concatenate([
        apply_conv(p["b3_2a"], x3, ksize=(1, 3), padding=(0, 1)),
        apply_conv(p["b3_2b"], x3, ksize=(3, 1), padding=(1, 0))], axis=-1)
    xd = apply_conv(p["bd_1"], x)
    xd = apply_conv(p["bd_2"], xd, ksize=3, padding=1)
    bd = jnp.concatenate([
        apply_conv(p["bd_3a"], xd, ksize=(1, 3), padding=(0, 1)),
        apply_conv(p["bd_3b"], xd, ksize=(3, 1), padding=(1, 0))], axis=-1)
    bp = apply_conv(p["bpool"], avg_pool_3x3_s1_p1(x))
    return jnp.concatenate([b1, b3, bd, bp], axis=-1)


def build_params(seed=0):
    pg = ParamGen(seed)
    P = {}
    P["Conv2d_1a_3x3"] = basic_conv2d(pg, 3, 32, 3)
    P["Conv2d_2a_3x3"] = basic_conv2d(pg, 32, 32, 3)
    P["Conv2d_2b_3x3"] = basic_conv2d(pg, 32, 64, 3)
    P["Conv2d_3b_1x1"] = basic_conv2d(pg, 64, 80, 1)
    P["Conv2d_4a_3x3"] = basic_conv2d(pg, 80, 192, 3)
    P["Mixed_5b"] = inception_a(pg, 192, 32)
    P["Mixed_5c"] = inception_a(pg, 256, 64)
    P["Mixed_5d"] = inception_a(pg, 288, 64)
    P["Mixed_6a"] = inception_b(pg, 288)
    P["Mixed_6b"] = inception_c(pg, 768, 128)
    P["Mixed_6c"] = inception_c(pg, 768, 160)
    P["Mixed_6d"] = inception_c(pg, 768, 160)
    P["Mixed_6e"] = inception_c(pg, 768, 192)
    P["Mixed_7a"] = inception_d(pg, 768)
    P["Mixed_7b"] = inception_e(pg, 1280)
    P["Mixed_7c"] = inception_e(pg, 2048)
    # trainable heads defined by CNN_ENCODER itself (uniform(-0.1, 0.1) init)
    P["emb_features_w"] = jax.random.uniform(
        pg.next(), (768, NEF), jnp.float32, -0.1, 0.1).astype(jnp.bfloat16)
    P["emb_cnn_code_w"] = jax.random.uniform(
        pg.next(), (2048, NEF), jnp.float32, -0.1, 0.1).astype(jnp.bfloat16)
    P["emb_cnn_code_b"] = jax.random.uniform(
        pg.next(), (NEF,), jnp.float32, -0.1, 0.1).reshape(1, NEF)
    P["id_scale"] = jnp.ones((1, NEF), jnp.float32)
    P["zero_bias"] = jnp.zeros((1, NEF), jnp.float32)
    return P


# ----------------------------------------------------------------------------
# Forward pass (mirrors CNN_ENCODER.forward)
# ----------------------------------------------------------------------------
def cnn_encoder_forward(P, x_nchw):
    B = x_nchw.shape[0]
    x = jnp.transpose(x_nchw, (0, 2, 3, 1)).astype(jnp.float32)   # NCHW -> NHWC
    x = jax.image.resize(x, (B, 299, 299, x.shape[-1]), method="bilinear")
    x = x.astype(jnp.bfloat16)                                    # bf16 activations
    x = apply_conv(P["Conv2d_1a_3x3"], x, ksize=3, stride=2)      # 149x149x32
    x = apply_conv(P["Conv2d_2a_3x3"], x, ksize=3)                # 147x147x32
    x = apply_conv(P["Conv2d_2b_3x3"], x, ksize=3, padding=1)     # 147x147x64
    x = max_pool_3x3_s2(x)                                        # 73x73x64
    x = apply_conv(P["Conv2d_3b_1x1"], x)                         # 73x73x80
    x = apply_conv(P["Conv2d_4a_3x3"], x, ksize=3)                # 71x71x192
    x = max_pool_3x3_s2(x)                                        # 35x35x192
    x = apply_inception_a(P["Mixed_5b"], x)                       # 35x35x256
    x = apply_inception_a(P["Mixed_5c"], x)                       # 35x35x288
    x = apply_inception_a(P["Mixed_5d"], x)                       # 35x35x288
    x = apply_inception_b(P["Mixed_6a"], x)                       # 17x17x768
    x = apply_inception_c(P["Mixed_6b"], x)
    x = apply_inception_c(P["Mixed_6c"], x)
    x = apply_inception_c(P["Mixed_6d"], x)
    x = apply_inception_c(P["Mixed_6e"], x)                       # 17x17x768
    features = x
    x = apply_inception_d(P["Mixed_7a"], x)                       # 8x8x1280
    x = apply_inception_e(P["Mixed_7b"], x)                       # 8x8x2048
    x = apply_inception_e(P["Mixed_7c"], x)                       # 8x8x2048

    # avg_pool2d(kernel=8) + view + Linear(2048 -> 256): pool in f32, then the
    # Linear reuses the fused Pallas matmul (scale=1, bias=linear bias).
    pooled = jnp.mean(x.astype(jnp.float32), axis=(1, 2)).astype(jnp.bfloat16)
    cnn_code = fused_matmul(pooled, P["emb_cnn_code_w"], P["id_scale"],
                            P["emb_cnn_code_b"], relu=False,
                            out_dtype=jnp.float32)

    # emb_features: 1x1 conv 768 -> 256, no bias / BN / ReLU.
    fm = features.reshape(B * 17 * 17, 768)
    fe = fused_matmul(fm, P["emb_features_w"], P["id_scale"], P["zero_bias"],
                      relu=False, out_dtype=jnp.float32)
    features_out = jnp.transpose(fe.reshape(B, 17, 17, NEF), (0, 3, 1, 2))
    return features_out, cnn_code


if __name__ == "__main__":
    key = jax.random.PRNGKey(0)
    x = jax.random.normal(key, (2, 3, 16, 16), jnp.float32)   # NCHW input image
    params = build_params(seed=0)
    features, cnn_code = cnn_encoder_forward(params, x)
    features, cnn_code = jax.block_until_ready((features, cnn_code))
    assert features.shape == (2, 256, 17, 17), features.shape
    assert cnn_code.shape == (2, 256), cnn_code.shape
    assert features.dtype == jnp.float32 and cnn_code.dtype == jnp.float32
    assert bool(jnp.all(jnp.isfinite(features))) and bool(jnp.all(jnp.isfinite(cnn_code)))
    print("KERNEL_OK")
</pallas_src>

<mosaic_0001>
module attributes {stable_mosaic.version = 11 : i64} {
  func.func @_mm_kernel(%arg0: i32, %arg1: memref<256x27xbf16, #tpu.memory_space<vmem>>, %arg2: memref<27x32xbf16, #tpu.memory_space<vmem>>, %arg3: memref<1x32xf32, #tpu.memory_space<vmem>>, %arg4: memref<1x32xf32, #tpu.memory_space<vmem>>, %arg5: memref<256x32xbf16, #tpu.memory_space<vmem>>) attributes {dimension_semantics = [#tpu.dimension_semantics<parallel>], iteration_bounds = array<i64: 174>, scalar_prefetch = 0 : i64, scratch_operands = 0 : i64, tpu.core_type = #tpu.core_type<tc>, window_params = [{transform_indices = @transform_0, window_bounds = array<i64: 256, 27>}, {pipeline_mode = #tpu.pipeline_mode<synchronous>, transform_indices = @transform_1, window_bounds = array<i64: 27, 32>}, {pipeline_mode = #tpu.pipeline_mode<synchronous>, transform_indices = @transform_2, window_bounds = array<i64: 1, 32>}, {pipeline_mode = #tpu.pipeline_mode<synchronous>, transform_indices = @transform_3, window_bounds = array<i64: 1, 32>}, {transform_indices = @transform_4, window_bounds = array<i64: 256, 32>}]} {
    %c0 = arith.constant 0 : index
    %c0_0 = arith.constant 0 : index
    %0 = vector.load %arg1[%c0, %c0_0] : memref<256x27xbf16, #tpu.memory_space<vmem>>, vector<256x27xbf16>
    %c0_1 = arith.constant 0 : index
    %c0_2 = arith.constant 0 : index
    %1 = vector.load %arg2[%c0_1, %c0_2] : memref<27x32xbf16, #tpu.memory_space<vmem>>, vector<27x32xbf16>
    %cst = arith.constant dense<0.000000e+00> : vector<256x32xf32>
    %2 = tpu.matmul %0, %1, %cst {dimension_numbers = #tpu.dot_dimension_numbers<[1], [0], [0], [1], [0, 0, 1, 1], [], []>} : vector<256x27xbf16>, vector<27x32xbf16>, vector<256x32xf32> -> vector<256x32xf32>
    %c0_3 = arith.constant 0 : index
    %c0_4 = arith.constant 0 : index
    %3 = vector.load %arg3[%c0_3, %c0_4] : memref<1x32xf32, #tpu.memory_space<vmem>>, vector<1x32xf32>
    %4 = vector.broadcast %3 : vector<1x32xf32> to vector<256x32xf32>
    %5 = arith.mulf %2, %4 : vector<256x32xf32>
    %c0_5 = arith.constant 0 : index
    %c0_6 = arith.constant 0 : index
    %6 = vector.load %arg4[%c0_5, %c0_6] : memref<1x32xf32, #tpu.memory_space<vmem>>, vector<1x32xf32>
    %7 = vector.broadcast %6 : vector<1x32xf32> to vector<256x32xf32>
    %8 = arith.addf %5, %7 : vector<256x32xf32>
    %cst_7 = arith.constant 0.000000e+00 : f32
    %9 = vector.broadcast %cst_7 : f32 to vector<256x32xf32>
    %10 = arith.maximumf %8, %9 : vector<256x32xf32>
    %11 = arith.truncf %10 : vector<256x32xf32> to vector<256x32xbf16>
    %c0_8 = arith.constant 0 : index
    %c0_9 = arith.constant 0 : index
    %12 = vector.load %arg5[%c0_8, %c0_9] : memref<256x32xbf16, #tpu.memory_space<vmem>>, vector<256x32xbf16>
    tpu.vector_store %arg5[%c0_8, %c0_9], %11 {strides = array<i32>} : memref<256x32xbf16, #tpu.memory_space<vmem>>, vector<256x32xbf16>,
    return
  }
  func.func @transform_0(%arg0: i32) -> (i32, i32) {
    %c0_i32 = arith.constant 0 : i32
    %c0_i32_0 = arith.constant 0 : i32
    return %arg0, %c0_i32 : i32, i32
  }
  func.func @transform_1(%arg0: i32) -> (i32, i32) {
    %c0_i32 = arith.constant 0 : i32
    %c0_i32_0 = arith.constant 0 : i32
    %c0_i32_1 = arith.constant 0 : i32
    return %c0_i32, %c0_i32_0 : i32, i32
  }
  func.func @transform_2(%arg0: i32) -> (i32, i32) {
    %c0_i32 = arith.constant 0 : i32
    %c0_i32_0 = arith.constant 0 : i32
    %c0_i32_1 = arith.constant 0 : i32
    return %c0_i32, %c0_i32_0 : i32, i32
  }
  func.func @transform_3(%arg0: i32) -> (i32, i32) {
    %c0_i32 = arith.constant 0 : i32
    %c0_i32_0 = arith.constant 0 : i32
    %c0_i32_1 = arith.constant 0 : i32
    return %c0_i32, %c0_i32_0 : i32, i32
  }
  func.func @transform_4(%arg0: i32) -> (i32, i32) {
    %c0_i32 = arith.constant 0 : i32
    %c0_i32_0 = arith.constant 0 : i32
    return %arg0, %c0_i32 : i32, i32
  }
}

</mosaic_0001>

<bundles_post_ra>
// kernel: fused_matmul.1
= control target key start
LH: loop header
LB: loop body
LE: loop exit
PB: predicated region body
PF: predicated region fallthrough
CT: control target
= control target key end

     0   :  { %s1581_s15 = smov 0   ;;  %s1583_s16 = smov 0   ;;  %s1934_s0 = inlined_call_operand.vmem [shape: bf16[44402,27], index: 0, kind: input, shape index: {}]   ;;  %s1935_s1 = inlined_call_operand.vmem [shape: bf16[27,32], index: 1, kind: input, shape index: {}]   ;;  %s1936_s2 = inlined_call_operand.vmem [shape: f32[1,32], index: 2, kind: input, shape index: {}]   ;;  %s1937_s3 = inlined_call_operand.vmem [shape: f32[1,32], index: 3, kind: input, shape index: {}]   ;;  %s1938_s4 = inlined_call_operand.vmem [shape: bf16[44402,32], index: 4, kind: output, shape index: {}]  }
   0x1   :  { %s1585_s17 = smov 0  }
   0x2 LB: > { %s1594_s18 = sadd.s32 4294967295, %s1521_s17   ;;  %s1596_s19 = sadd.s32 1, %s1521_s17   ;;  %s1521_s17 = sphi %s1585_s17, %s1945_s17   ;;  %s1517_s16 = sphi %s1583_s16, %s1944_s16   ;;  %s1513_s15 = sphi %s1581_s15, %s1943_s15  }
   0x3   : > { %s107_s20 = ssub.s32 %s1521_s17, %s1596_s19  ;;  %s110_s21 = sadd.s32 1, %s1517_s16 }
   0x4   : > { %p108_p0 = scmp.eq.s32.totalorder %s107_s20, 0  ;;  %p120_p1 = scmp.ne.s32.totalorder %s1517_s16, %s1513_s15 }
   0x5   : > { %p121_p2 = scmp.eq.s32.totalorder %s1594_s18, 173  ;;  %p1178_p3 = scmp.ge.s32.totalorder %s1521_s17, 1 }
   0x6   : > { %s1604_s22 = scalar_select %p108_p0, %s1517_s16, %s110_s21  }
   0x7   : > { %p1606_p4 = por %p121_p2, %p120_p1  ;;  %p171_p5 = scmp.lt.s32.totalorder %s1521_s17, 175 }
   0x9   : > { %p172_p6 = pnand %p1178_p3, %p171_p5 }
   0xa   : > { %s1614_s26 = sshll.u32 (!%p172_p6), %s1594_s18, 5  ;;  %s197_s10 = sand.u32 (!%p172_p6), 1, %s1513_s15  }
   0xb   : > { %175 = sbr.rel (%p172_p6) target bundleno = 324 (0x144), region = 36  ;;  %p205_p7 = scmp.lt.s32.totalorder (!%p172_p6), %s1614_s26, 5550 }
   0xc   : > { %s1179_s13 = sshll.u32 (!%p172_p6), %s197_s10, 7 }
   0xd   : > { %s1683_s14 = scalar_lea.vmem (!%p172_p6), [#allocation2], %s1179_s13  }
  0x10   : > { %v1449_v0 = vld [vmem:[%s1935_s1 + $0x8] sm:$0x3f]   ;;  %vm396_vm0 = vcmask 1044480   ;;  %vm397_vm1 = vcmask 1045504   ;;  %v1555_v1 = vmov 65535   ;;  %v1450_v5 = vld [vmem:[%s1935_s1] sm:$0xff]  }
  0x11   : > { %v398_v2 = vsel %vm396_vm0, 4294967295, %v1555_v1  ;;  %s206_s29 = scalar_select %p205_p7, %s1614_s26, 5550  ;;  %vm347_vm2 = vcmask 220160   ;;  %v1661_v22 = vld [vmem:[%s1936_s2] ss:$0 sm:$0xff]  ;;  %vm802_vm3 = vcmask 257024  }
  0x12   : > { %v399_v3 = vsel %vm397_vm1, %v398_v2, 0  ;;  %v1667_v24 = vld [vmem:[%s1937_s3] ss:$0 sm:$0xff]  ;;  %s843_s15 = ssub.s32 (%p1606_p4), 5551, %s1614_s26  ;;  %s1299_s17 = sshll.u32 (%p1606_p4), %s1594_s18, 7 }
  0x13   : > { %v401_v4 = vand.u32 %v1449_v0, %v399_v3  ;;  %s1181_s30 = sshll.u32 %s206_s29, 2  ;;  %p844_p8 = scmp.lt.s32.totalorder (%p1606_p4), %s843_s15, 32 }
  0x14   : > { %s1624_s7 = scalar_lea.vmem %s1934_s0, %s1181_s30  ;;  %s1806_s24 = scalar_lea.vmem (%p1606_p4), %s1938_s4, %s1299_s17  }
  0x15   : > { %1320 = vmatprep.subr.bf16.mxu0 %v401_v4  ;;  %1356 = vmatprep.subr.bf16.mxu1 %v401_v4  ;;  %v1451_v6 = vld [vmem:[%s1624_s7] sm:$0xff]   ;;  %v1453_v8 = vld [vmem:[%s1624_s7 + $0x8] sm:$0xff]   ;;  %v1455_v10 = vld [vmem:[%s1624_s7 + $0x10] sm:$0xff]  }
  0x16   : > { %1321 = vmatpush3.bf16.msra.mxu0 %v401_v4  ;;  %1358 = vmatpush3.bf16.msra.mxu1 %v401_v4  ;;  %v1452_v7 = vld [vmem:[%s1624_s7 + $0x40] sm:$0xff]   ;;  %v1454_v9 = vld [vmem:[%s1624_s7 + $0x48] sm:$0xff]   ;;  %v1456_v11 = vld [vmem:[%s1624_s7 + $0x50] sm:$0xff]  }
  0x17   : > { %1322 = vmatprep.subr.bf16.mxu0 %v1450_v5  ;;  %1357 = vmatprep.subr.bf16.mxu1 %v1450_v5  ;;  %v1457_v12 = vld [vmem:[%s1624_s7 + $0x18] sm:$0xff]   ;;  %v1459_v14 = vld [vmem:[%s1624_s7 + $0x20] sm:$0xff]   ;;  %v1461_v16 = vld [vmem:[%s1624_s7 + $0x28] sm:$0xff]  }
  0x18   : > { %1324 = vmatprep.mubr.msk.bf16.mxu0 %vm347_vm2, %v1451_v6  ;;  %1340 = vmatprep.mubr.msk.bf16.mxu1 %vm347_vm2, %v1452_v7  ;;  %v1458_v13 = vld [vmem:[%s1624_s7 + $0x58] sm:$0xff]   ;;  %v1460_v15 = vld [vmem:[%s1624_s7 + $0x60] sm:$0xff]   ;;  %v1462_v17 = vld [vmem:[%s1624_s7 + $0x68] sm:$0xff]  }
  0x19   : > { %v1463_v18 = vld [vmem:[%s1624_s7 + $0x30] sm:$0xff]   ;;  %v1465_v20 = vld [vmem:[%s1624_s7 + $0x38] sm:$0xff]  }
  0x1a   : > { %1323 = vmatpush3.bf16.msra.mxu0 %v1450_v5  ;;  %1359 = vmatpush3.bf16.msra.mxu1 %v1450_v5  ;;  %v1464_v19 = vld [vmem:[%s1624_s7 + $0x70] sm:$0xff]   ;;  %v1466_v21 = vld [vmem:[%s1624_s7 + $0x78] sm:$0xff]  }
  0x1d   : > { %1325 = vmatmul.mubr.msk.bf16.vlgmr.msra.gmra.mxu0 %vm347_vm2, %v1453_v8  ;;  %1341 = vmatmul.mubr.msk.bf16.vlgmr.msra.gmra.mxu1 %vm347_vm2, %v1454_v9 }
  0x1e   : > { %1328 = vmatprep.mubr.msk.bf16.mxu0 %vm347_vm2, %v1455_v10  ;;  %1344 = vmatprep.mubr.msk.bf16.mxu1 %vm347_vm2, %v1456_v11 }
  0x25   : > { %1329 = vmatmul.mubr.msk.bf16.gmra.mxu0 %vm347_vm2, %v1457_v12  ;;  %1345 = vmatmul.mubr.msk.bf16.gmra.mxu1 %vm347_vm2, %v1458_v13 }
  0x26   : > { %1332 = vmatprep.mubr.msk.bf16.mxu0 %vm347_vm2, %v1459_v14  ;;  %1348 = vmatprep.mubr.msk.bf16.mxu1 %vm347_vm2, %v1460_v15 }
  0x2d   : > { %1333 = vmatmul.mubr.msk.bf16.gmra.mxu0 %vm347_vm2, %v1461_v16  ;;  %1349 = vmatmul.mubr.msk.bf16.gmra.mxu1 %vm347_vm2, %v1462_v17 }
  0x2e   : > { %1336 = vmatprep.mubr.msk.bf16.mxu0 %vm347_vm2, %v1463_v18  ;;  %1352 = vmatprep.mubr.msk.bf16.mxu1 %vm347_vm2, %v1464_v19 }
  0x35   : > { %1337 = vmatmul.mubr.msk.bf16.gmra.mxu0 %vm347_vm2, %v1465_v20  ;;  %1353 = vmatmul.mubr.msk.bf16.gmra.mxu1 %vm347_vm2, %v1466_v21 }
  0xdd   : > { %v1326_v23 = vpop.f32.mrf.mxu0  ;;  %v1342_v25 = vpop.f32.mrf.mxu1 }
  0xde   : > { %v573_v26 = vmul.f32 %v1326_v23, %v1661_v22  ;;  %v589_v27 = vmul.f32 %v1342_v25, %v1661_v22 }
  0xdf   : > { %v437_v28 = vpop.f32.mrf.mxu0  ;;  %v501_v29 = vpop.f32.mrf.mxu1 }
  0xe0   : > { %v612_v30 = vadd.f32 %v1667_v24, %v573_v26  ;;  %v628_v31 = vadd.f32 %v1667_v24, %v589_v27  ;;  %v571_v32 = vmul.f32 %v1661_v22, %v437_v28  ;;  %v587_v33 = vmul.f32 %v1661_v22, %v501_v29 }
  0xe1   : > { %v1327_v34 = vpop.f32.mrf.mxu0  ;;  %v1343_v35 = vpop.f32.mrf.mxu1 }
  0xe2   : > { %v644_v36 = vmax.f32 %v612_v30, 0.0  ;;  %v660_v37 = vmax.f32 %v628_v31, 0.0  ;;  %v610_v38 = vadd.f32 %v1667_v24, %v571_v32  ;;  %v626_v39 = vadd.f32 %v1667_v24, %v587_v33 }
  0xe3   : > { %v574_v40 = vmul.f32 %v1327_v34, %v1661_v22  ;;  %v590_v41 = vmul.f32 %v1343_v35, %v1661_v22  ;;  %v440_v42 = vpop.f32.mrf.mxu0  ;;  %v504_v43 = vpop.f32.mrf.mxu1 }
  0xe4   : > { %v1269_v44 = vpack.c.bf16 %v644_v36, %v644_v36  ;;  %v1285_v45 = vpack.c.bf16 %v660_v37, %v660_v37  ;;  %v642_v46 = vmax.f32 %v610_v38, 0.0  ;;  %v658_v47 = vmax.f32 %v626_v39, 0.0 }
  0xe5   : > { %v613_v48 = vadd.f32 %v1667_v24, %v574_v40  ;;  %v629_v49 = vadd.f32 %v1667_v24, %v590_v41  ;;  %v572_v50 = vmul.f32 %v1661_v22, %v440_v42  ;;  %v588_v51 = vmul.f32 %v1661_v22, %v504_v43  ;;  %v1330_v52 = vpop.f32.mrf.mxu0  ;;  %v1346_v53 = vpop.f32.mrf.mxu1 }
  0xe6   : > { %805 = vst.msk [vmem:[%s1683_s14 + $0x8] sm:$0xf] %vm802_vm3, %v1269_v44  ;;  %821 = vst.msk [vmem:[%s1683_s14 + $0x48] sm:$0xf] %vm802_vm3, %v1285_v45  ;;  %v1267_v54 = vpack.c.bf16 %v642_v46, %v642_v46  ;;  %v1283_v55 = vpack.c.bf16 %v658_v47, %v658_v47  ;;  %v577_v56 = vmul.f32 %v1330_v52, %v1661_v22 }
  0xe7   : > { %v593_v57 = vmul.f32 %v1346_v53, %v1661_v22  ;;  %v645_v58 = vmax.f32 %v613_v48, 0.0  ;;  %v661_v59 = vmax.f32 %v629_v49, 0.0  ;;  %v611_v60 = vadd.f32 %v1667_v24, %v572_v50  ;;  %v453_v62 = vpop.f32.mrf.mxu0  ;;  %v517_v63 = vpop.f32.mrf.mxu1 }
  0xe8   : > { %v627_v61 = vadd.f32 %v1667_v24, %v588_v51  ;;  %803 = vst.msk [vmem:[%s1683_s14] sm:$0xf] %vm802_vm3, %v1267_v54  ;;  %819 = vst.msk [vmem:[%s1683_s14 + $0x40] sm:$0xf] %vm802_vm3, %v1283_v55  ;;  %v616_v0 = vadd.f32 %v1667_v24, %v577_v56  ;;  %v575_v2 = vmul.f32 %v1661_v22, %v453_v62 }
  0xe9   : > { %v632_v1 = vadd.f32 %v1667_v24, %v593_v57  ;;  %v591_v3 = vmul.f32 %v1661_v22, %v517_v63  ;;  %v1270_v4 = vpack.c.bf16 %v645_v58, %v645_v58  ;;  %v1286_v5 = vpack.c.bf16 %v661_v59, %v661_v59  ;;  %v1331_v8 = vpop.f32.mrf.mxu0  ;;  %v1347_v9 = vpop.f32.mrf.mxu1 }
  0xea   : > { %v643_v6 = vmax.f32 %v611_v60, 0.0  ;;  %v659_v7 = vmax.f32 %v627_v61, 0.0  ;;  %v648_v10 = vmax.f32 %v616_v0, 0.0  ;;  %v614_v12 = vadd.f32 %v1667_v24, %v575_v2 }
  0xeb   : > { %v664_v11 = vmax.f32 %v632_v1, 0.0  ;;  %v630_v13 = vadd.f32 %v1667_v24, %v591_v3  ;;  %806 = vst.msk [vmem:[%s1683_s14 + $0xc] sm:$0xf] %vm802_vm3, %v1270_v4  ;;  %822 = vst.msk [vmem:[%s1683_s14 + $0x4c] sm:$0xf] %vm802_vm3, %v1286_v5  ;;  %v578_v16 = vmul.f32 %v1331_v8, %v1661_v22  ;;  %v594_v17 = vmul.f32 %v1347_v9, %v1661_v22  ;;  %v456_v18 = vpop.f32.mrf.mxu0  ;;  %v520_v19 = vpop.f32.mrf.mxu1 }
  0xec   : > { %v1268_v14 = vpack.c.bf16 %v643_v6, %v643_v6  ;;  %v1284_v15 = vpack.c.bf16 %v659_v7, %v659_v7  ;;  %v1273_v20 = vpack.c.bf16 %v648_v10, %v648_v10  ;;  %v646_v23 = vmax.f32 %v614_v12, 0.0 }
  0xed   : > { %v1289_v21 = vpack.c.bf16 %v664_v11, %v664_v11  ;;  %v662_v25 = vmax.f32 %v630_v13, 0.0  ;;  %v617_v26 = vadd.f32 %v1667_v24, %v578_v16  ;;  %v633_v27 = vadd.f32 %v1667_v24, %v594_v17  ;;  %v1334_v30 = vpop.f32.mrf.mxu0  ;;  %v1350_v31 = vpop.f32.mrf.mxu1 }
  0xee   : > { %804 = vst.msk [vmem:[%s1683_s14 + $0x4] sm:$0xf] %vm802_vm3, %v1268_v14  ;;  %820 = vst.msk [vmem:[%s1683_s14 + $0x44] sm:$0xf] %vm802_vm3, %v1284_v15  ;;  %v576_v28 = vmul.f32 %v1661_v22, %v456_v18  ;;  %v592_v29 = vmul.f32 %v1661_v22, %v520_v19  ;;  %v1271_v32 = vpack.c.bf16 %v646_v23, %v646_v23 }
  0xef   : > { %809 = vst.msk [vmem:[%s1683_s14 + $0x18] sm:$0xf] %vm802_vm3, %v1273_v20  ;;  %825 = vst.msk [vmem:[%s1683_s14 + $0x58] sm:$0xf] %vm802_vm3, %v1289_v21  ;;  %v1287_v33 = vpack.c.bf16 %v662_v25, %v662_v25  ;;  %v581_v34 = vmul.f32 %v1334_v30, %v1661_v22  ;;  %v597_v35 = vmul.f32 %v1350_v31, %v1661_v22  ;;  %v649_v36 = vmax.f32 %v617_v26, 0.0  ;;  %v469_v40 = vpop.f32.mrf.mxu0  ;;  %v533_v41 = vpop.f32.mrf.mxu1 }
  0xf0   : > { %v665_v37 = vmax.f32 %v633_v27, 0.0  ;;  %v615_v38 = vadd.f32 %v1667_v24, %v576_v28  ;;  %v631_v39 = vadd.f32 %v1667_v24, %v592_v29  ;;  %807 = vst.msk [vmem:[%s1683_s14 + $0x10] sm:$0xf] %vm802_vm3, %v1271_v32  ;;  %v579_v44 = vmul.f32 %v1661_v22, %v469_v40 }
  0xf1   : > { %823 = vst.msk [vmem:[%s1683_s14 + $0x50] sm:$0xf] %vm802_vm3, %v1287_v33  ;;  %v620_v42 = vadd.f32 %v1667_v24, %v581_v34  ;;  %v636_v43 = vadd.f32 %v1667_v24, %v597_v35  ;;  %v595_v45 = vmul.f32 %v1661_v22, %v533_v41  ;;  %v1274_v46 = vpack.c.bf16 %v649_v36, %v649_v36  ;;  %v1335_v50 = vpop.f32.mrf.mxu0  ;;  %v1351_v51 = vpop.f32.mrf.mxu1 }
  0xf2   : > { %v1290_v47 = vpack.c.bf16 %v665_v37, %v665_v37  ;;  %v647_v48 = vmax.f32 %v615_v38, 0.0  ;;  %v663_v49 = vmax.f32 %v631_v39, 0.0  ;;  %v618_v54 = vadd.f32 %v1667_v24, %v579_v44 }
  0xf3   : > { %v652_v52 = vmax.f32 %v620_v42, 0.0  ;;  %v668_v53 = vmax.f32 %v636_v43, 0.0  ;;  %v634_v55 = vadd.f32 %v1667_v24, %v595_v45  ;;  %810 = vst.msk [vmem:[%s1683_s14 + $0x1c] sm:$0xf] %vm802_vm3, %v1274_v46  ;;  %v582_v58 = vmul.f32 %v1335_v50, %v1661_v22  ;;  %v472_v60 = vpop.f32.mrf.mxu0  ;;  %v536_v61 = vpop.f32.mrf.mxu1 }
  0xf4   : > { %826 = vst.msk [vmem:[%s1683_s14 + $0x5c] sm:$0xf] %vm802_vm3, %v1290_v47  ;;  %v1272_v56 = vpack.c.bf16 %v647_v48, %v647_v48  ;;  %v1288_v57 = vpack.c.bf16 %v663_v49, %v663_v49  ;;  %v598_v59 = vmul.f32 %v1351_v51, %v1661_v22  ;;  %v650_v0 = vmax.f32 %v618_v54, 0.0 }
  0xf5   : > { %v1277_v62 = vpack.c.bf16 %v652_v52, %v652_v52  ;;  %v1293_v63 = vpack.c.bf16 %v668_v53, %v668_v53  ;;  %v666_v1 = vmax.f32 %v634_v55, 0.0  ;;  %v621_v2 = vadd.f32 %v1667_v24, %v582_v58  ;;  %v1338_v6 = vpop.f32.mrf.mxu0  ;;  %v1354_v7 = vpop.f32.mrf.mxu1 }
  0xf6   : > { %808 = vst.msk [vmem:[%s1683_s14 + $0x14] sm:$0xf] %vm802_vm3, %v1272_v56  ;;  %824 = vst.msk [vmem:[%s1683_s14 + $0x54] sm:$0xf] %vm802_vm3, %v1288_v57  ;;  %v637_v3 = vadd.f32 %v1667_v24, %v598_v59  ;;  %v580_v4 = vmul.f32 %v1661_v22, %v472_v60  ;;  %v596_v5 = vmul.f32 %v1661_v22, %v536_v61 }
  0xf7   : > { %813 = vst.msk [vmem:[%s1683_s14 + $0x28] sm:$0xf] %vm802_vm3, %v1277_v62  ;;  %829 = vst.msk [vmem:[%s1683_s14 + $0x68] sm:$0xf] %vm802_vm3, %v1293_v63  ;;  %v1275_v8 = vpack.c.bf16 %v650_v0, %v650_v0  ;;  %v1291_v9 = vpack.c.bf16 %v666_v1, %v666_v1  ;;  %v585_v10 = vmul.f32 %v1338_v6, %v1661_v22  ;;  %v653_v12 = vmax.f32 %v621_v2, 0.0  ;;  %v485_v16 = vpop.f32.mrf.mxu0  ;;  %v549_v17 = vpop.f32.mrf.mxu1 }
  0xf8   : > { %v601_v11 = vmul.f32 %v1354_v7, %v1661_v22  ;;  %v669_v13 = vmax.f32 %v637_v3, 0.0  ;;  %v619_v14 = vadd.f32 %v1667_v24, %v580_v4  ;;  %v635_v15 = vadd.f32 %v1667_v24, %v596_v5 }
  0xf9   : > { %811 = vst.msk [vmem:[%s1683_s14 + $0x20] sm:$0xf] %vm802_vm3, %v1275_v8  ;;  %827 = vst.msk [vmem:[%s1683_s14 + $0x60] sm:$0xf] %vm802_vm3, %v1291_v9  ;;  %v624_v18 = vadd.f32 %v1667_v24, %v585_v10  ;;  %v583_v20 = vmul.f32 %v1661_v22, %v485_v16  ;;  %v599_v21 = vmul.f32 %v1661_v22, %v549_v17  ;;  %v1339_v28 = vpop.f32.mrf.mxu0  ;;  %v1355_v29 = vpop.f32.mrf.mxu1 }
  0xfa   : > { %v640_v19 = vadd.f32 %v1667_v24, %v601_v11  ;;  %v1278_v23 = vpack.c.bf16 %v653_v12, %v653_v12  ;;  %v1294_v25 = vpack.c.bf16 %v669_v13, %v669_v13  ;;  %v651_v26 = vmax.f32 %v619_v14, 0.0 }
  0xfb   : > { %v667_v27 = vmax.f32 %v635_v15, 0.0  ;;  %v656_v30 = vmax.f32 %v624_v18, 0.0  ;;  %v622_v32 = vadd.f32 %v1667_v24, %v583_v20  ;;  %v638_v33 = vadd.f32 %v1667_v24, %v599_v21  ;;  %v488_v38 = vpop.f32.mrf.mxu0  ;;  %v552_v39 = vpop.f32.mrf.mxu1 }
  0xfc   : > { %v672_v31 = vmax.f32 %v640_v19, 0.0  ;;  %814 = vst.msk [vmem:[%s1683_s14 + $0x2c] sm:$0xf] %vm802_vm3, %v1278_v23  ;;  %830 = vst.msk [vmem:[%s1683_s14 + $0x6c] sm:$0xf] %vm802_vm3, %v1294_v25  ;;  %v1276_v34 = vpack.c.bf16 %v651_v26, %v651_v26  ;;  %v586_v36 = vmul.f32 %v1339_v28, %v1661_v22  ;;  %v602_v37 = vmul.f32 %v1355_v29, %v1661_v22 }
  0xfd   : > { %v1292_v35 = vpack.c.bf16 %v667_v27, %v667_v27  ;;  %v1281_v40 = vpack.c.bf16 %v656_v30, %v656_v30  ;;  %v654_v42 = vmax.f32 %v622_v32, 0.0  ;;  %v670_v43 = vmax.f32 %v638_v33, 0.0 }
  0xfe   : > { %v1297_v41 = vpack.c.bf16 %v672_v31, %v672_v31  ;;  %812 = vst.msk [vmem:[%s1683_s14 + $0x24] sm:$0xf] %vm802_vm3, %v1276_v34  ;;  %v625_v44 = vadd.f32 %v1667_v24, %v586_v36  ;;  %v641_v45 = vadd.f32 %v1667_v24, %v602_v37  ;;  %v584_v46 = vmul.f32 %v1661_v22, %v488_v38 }
  0xff   : > { %828 = vst.msk [vmem:[%s1683_s14 + $0x64] sm:$0xf] %vm802_vm3, %v1292_v35  ;;  %v600_v47 = vmul.f32 %v1661_v22, %v552_v39  ;;  %817 = vst.msk [vmem:[%s1683_s14 + $0x38] sm:$0xf] %vm802_vm3, %v1281_v40  ;;  %v1279_v48 = vpack.c.bf16 %v654_v42, %v654_v42  ;;  %v1295_v49 = vpack.c.bf16 %v670_v43, %v670_v43 }
 0x100   : > { %833 = vst.msk [vmem:[%s1683_s14 + $0x78] sm:$0xf] %vm802_vm3, %v1297_v41  ;;  %v657_v50 = vmax.f32 %v625_v44, 0.0  ;;  %v673_v51 = vmax.f32 %v641_v45, 0.0  ;;  %v623_v52 = vadd.f32 %v1667_v24, %v584_v46 }
 0x101   : > { %v639_v53 = vadd.f32 %v1667_v24, %v600_v47  ;;  %815 = vst.msk [vmem:[%s1683_s14 + $0x30] sm:$0xf] %vm802_vm3, %v1279_v48  ;;  %831 = vst.msk [vmem:[%s1683_s14 + $0x70] sm:$0xf] %vm802_vm3, %v1295_v49 }
 0x102   : > { %v1282_v22 = vpack.c.bf16 %v657_v50, %v657_v50  ;;  %v1298_v54 = vpack.c.bf16 %v673_v51, %v673_v51  ;;  %v655_v55 = vmax.f32 %v623_v52, 0.0 }
 0x103   : > { %v671_v56 = vmax.f32 %v639_v53, 0.0  ;;  %841 = sbr.rel (!%p1606_p4) target bundleno = 324 (0x144), region = 40 }
 0x104   : > { %818 = vst.msk [vmem:[%s1683_s14 + $0x3c] sm:$0xf] %vm802_vm3, %v1282_v22  ;;  %834 = vst.msk [vmem:[%s1683_s14 + $0x7c] sm:$0xf] %vm802_vm3, %v1298_v54  ;;  %v1280_v57 = vpack.c.bf16 %v655_v55, %v655_v55 }
 0x105   : > { %v1296_v58 = vpack.c.bf16 %v671_v56, %v671_v56 }
 0x106   : > { %816 = vst.msk [vmem:[%s1683_s14 + $0x34] sm:$0xf] %vm802_vm3, %v1280_v57 }
 0x107   : > { %832 = vst.msk [vmem:[%s1683_s14 + $0x74] sm:$0xf] %vm802_vm3, %v1296_v58 }
 0x108   : > { %s1947_s15 = smov (!%p844_p8, %s843_s15), 32 }
 0x109   : > { %s1252_s25 = sshll.u32 %s1947_s15, 6 }
 0x10a   : > { %p1255_p9 = scmp.eq.s32.totalorder %s1252_s25, 0 }
 0x10b   : > { %s1812_s27 = sshrl.u32 (!%p1255_p9), %s1947_s15, 5 }
 0x10c   : > { %852 = sbr.rel (%p1255_p9) target bundleno = 324 (0x144), region = 44  ;;  %p1256_p10 = scmp.le.s32.totalorder (!%p1255_p9), %s1812_s27, 0 }
 0x111   : > { %1131 = sbr.rel (%p1256_p10) target bundleno = 307 (0x133), region = 116  ;;  %s1940_s18 = smov (!%p1256_p10), %s1806_s24 }
 0x112   : > { %s1941_s23 = smov (!%p1256_p10), %s1683_s14  ;;  %s1821_s26 = smov (!%p1256_p10), 0  }
 0x113   : > { %s1823_s28 = smov (!%p1256_p10), 0  }
 0x116 LB: >> { %v869_v24 = vld [vmem:[%s1529_s23] sm:$0xf]  ;;  %v871_v59 = vld [vmem:[%s1529_s23 + $0x4] sm:$0xf]  ;;  %v873_v60 = vld [vmem:[%s1529_s23 + $0x8] sm:$0xf]  ;;  %s1537_s28 = sphi %s1823_s28, %s863_s28   ;;  %s1533_s26 = sphi %s1821_s26, %s1942_s26   ;;  %s1529_s23 = sphi %s1941_s23, %s938_s23   ;;  %s1525_s18 = sphi %s1940_s18, %s939_s18  }
 0x117   : >> { %870 = vst [vmem:[%s1525_s18] sm:$0xf] %v869_v24  ;;  %872 = vst [vmem:[%s1525_s18 + $0x4] sm:$0xf] %v871_v59  ;;  %v875_v61 = vld [vmem:[%s1529_s23 + $0xc] sm:$0xf]  ;;  %s933_s29 = sadd.s32 1, %s1533_s26 }
 0x118   : >> { %874 = vst [vmem:[%s1525_s18 + $0x8] sm:$0xf] %v873_v60  ;;  %v877_v62 = vld [vmem:[%s1529_s23 + $0x10] sm:$0xf]  ;;  %v879_v63 = vld [vmem:[%s1529_s23 + $0x14] sm:$0xf]  ;;  %p934_p11 = scmp.ge.s32.totalorder %s933_s29, %s1812_s27 }
 0x119   : >> { %876 = vst [vmem:[%s1525_s18 + $0xc] sm:$0xf] %v875_v61  ;;  %878 = vst [vmem:[%s1525_s18 + $0x10] sm:$0xf] %v877_v62  ;;  %v881_v0 = vld [vmem:[%s1529_s23 + $0x18] sm:$0xf] }
 0x11a   : >> { %880 = vst [vmem:[%s1525_s18 + $0x14] sm:$0xf] %v879_v63  ;;  %v883_v1 = vld [vmem:[%s1529_s23 + $0x1c] sm:$0xf]  ;;  %v885_v2 = vld [vmem:[%s1529_s23 + $0x20] sm:$0xf] }
 0x11b   : >> { %882 = vst [vmem:[%s1525_s18 + $0x18] sm:$0xf] %v881_v0  ;;  %884 = vst [vmem:[%s1525_s18 + $0x1c] sm:$0xf] %v883_v1  ;;  %v887_v3 = vld [vmem:[%s1529_s23 + $0x24] sm:$0xf] }
 0x11c   : >> { %886 = vst [vmem:[%s1525_s18 + $0x20] sm:$0xf] %v885_v2  ;;  %v889_v4 = vld [vmem:[%s1529_s23 + $0x28] sm:$0xf]  ;;  %v891_v5 = vld [vmem:[%s1529_s23 + $0x2c] sm:$0xf] }
 0x11d   : >> { %888 = vst [vmem:[%s1525_s18 + $0x24] sm:$0xf] %v887_v3  ;;  %890 = vst [vmem:[%s1525_s18 + $0x28] sm:$0xf] %v889_v4  ;;  %v893_v6 = vld [vmem:[%s1529_s23 + $0x30] sm:$0xf] }
 0x11e   : >> { %892 = vst [vmem:[%s1525_s18 + $0x2c] sm:$0xf] %v891_v5  ;;  %v895_v7 = vld [vmem:[%s1529_s23 + $0x34] sm:$0xf]  ;;  %v897_v8 = vld [vmem:[%s1529_s23 + $0x38] sm:$0xf] }
 0x11f   : >> { %894 = vst [vmem:[%s1525_s18 + $0x30] sm:$0xf] %v893_v6  ;;  %896 = vst [vmem:[%s1525_s18 + $0x34] sm:$0xf] %v895_v7  ;;  %v899_v9 = vld [vmem:[%s1529_s23 + $0x3c] sm:$0xf] }
 0x120   : >> { %898 = vst [vmem:[%s1525_s18 + $0x38] sm:$0xf] %v897_v8  ;;  %v901_v10 = vld [vmem:[%s1529_s23 + $0x40] sm:$0xf]  ;;  %v903_v11 = vld [vmem:[%s1529_s23 + $0x44] sm:$0xf] }
 0x121   : >> { %900 = vst [vmem:[%s1525_s18 + $0x3c] sm:$0xf] %v899_v9  ;;  %902 = vst [vmem:[%s1525_s18 + $0x40] sm:$0xf] %v901_v10  ;;  %v905_v12 = vld [vmem:[%s1529_s23 + $0x48] sm:$0xf] }
 0x122   : >> { %904 = vst [vmem:[%s1525_s18 + $0x44] sm:$0xf] %v903_v11  ;;  %v907_v13 = vld [vmem:[%s1529_s23 + $0x4c] sm:$0xf]  ;;  %v909_v14 = vld [vmem:[%s1529_s23 + $0x50] sm:$0xf] }
 0x123   : >> { %906 = vst [vmem:[%s1525_s18 + $0x48] sm:$0xf] %v905_v12  ;;  %908 = vst [vmem:[%s1525_s18 + $0x4c] sm:$0xf] %v907_v13  ;;  %v911_v15 = vld [vmem:[%s1529_s23 + $0x54] sm:$0xf] }
 0x124   : >> { %910 = vst [vmem:[%s1525_s18 + $0x50] sm:$0xf] %v909_v14  ;;  %v913_v16 = vld [vmem:[%s1529_s23 + $0x58] sm:$0xf]  ;;  %v915_v17 = vld [vmem:[%s1529_s23 + $0x5c] sm:$0xf] }
 0x125   : >> { %912 = vst [vmem:[%s1525_s18 + $0x54] sm:$0xf] %v911_v15  ;;  %914 = vst [vmem:[%s1525_s18 + $0x58] sm:$0xf] %v913_v16  ;;  %v917_v18 = vld [vmem:[%s1529_s23 + $0x60] sm:$0xf] }
 0x126   : >> { %916 = vst [vmem:[%s1525_s18 + $0x5c] sm:$0xf] %v915_v17  ;;  %v919_v19 = vld [vmem:[%s1529_s23 + $0x64] sm:$0xf]  ;;  %v921_v20 = vld [vmem:[%s1529_s23 + $0x68] sm:$0xf] }
 0x127   : >> { %918 = vst [vmem:[%s1525_s18 + $0x60] sm:$0xf] %v917_v18  ;;  %920 = vst [vmem:[%s1525_s18 + $0x64] sm:$0xf] %v919_v19  ;;  %v923_v21 = vld [vmem:[%s1529_s23 + $0x6c] sm:$0xf] }
 0x128   : >> { %922 = vst [vmem:[%s1525_s18 + $0x68] sm:$0xf] %v921_v20  ;;  %v925_v23 = vld [vmem:[%s1529_s23 + $0x70] sm:$0xf]  ;;  %v927_v25 = vld [vmem:[%s1529_s23 + $0x74] sm:$0xf] }
 0x129   : >> { %924 = vst [vmem:[%s1525_s18 + $0x6c] sm:$0xf] %v923_v21  ;;  %926 = vst [vmem:[%s1525_s18 + $0x70] sm:$0xf] %v925_v23  ;;  %v929_v26 = vld [vmem:[%s1529_s23 + $0x78] sm:$0xf] }
 0x12a   : >> { %928 = vst [vmem:[%s1525_s18 + $0x74] sm:$0xf] %v927_v25  ;;  %v931_v27 = vld [vmem:[%s1529_s23 + $0x7c] sm:$0xf]  ;;  %930 = vst [vmem:[%s1525_s18 + $0x78] sm:$0xf] %v929_v26 }
 0x12b   : >> { %932 = vst [vmem:[%s1525_s18 + $0x7c] sm:$0xf] %v931_v27  ;;  %s1949_s29 = smov (%p934_p11, %s933_s29), 0  ;;  %s863_s28 = sadd.s32 1, %s1537_s28  }
 0x12c   : >> { %s1257_s30 = sshll.u32 %s1949_s29, 7  ;;  %p862_p12 = scmp.ge.s32.totalorder %s863_s28, %s1812_s27 }
 0x12d   : >> { %s938_s23 = scalar_lea.vmem %s1683_s14, %s1257_s30 [#allocation2]   ;;  %s939_s18 = scalar_lea.vmem %s1806_s24, %s1257_s30  }
 0x12e   : >> { %s1942_s26 = smov %s1949_s29  ;;  %865 = sbr.rel (!%p862_p12) target bundleno = 278 (0x116), region = 122 }
 0x133 PF: > { %s1916_s5 = sand.u32 31, %s1947_s15   ;;  %s1300_s6 = sshll.u32 %s1812_s27, 7 }
 0x134   : > { %s944_s7 = scalar_lea.vmem %s1683_s14, %s1300_s6 [#allocation2]   ;;  %s946_s8 = scalar_lea.vmem %s1806_s24, %s1300_s6  }
 0x135   : > { %p1262_p13 = scmp.le.s32.totalorder %s1916_s5, 0 }
 0x136   : > { %s1539_s9 = smov (!%p1262_p13), %s946_s8   ;;  %s1543_s10 = smov (!%p1262_p13), %s944_s7  }
 0x137   : > { %1145 = sbr.rel (%p1262_p13) target bundleno = 324 (0x144), region = 127  ;;  %s1547_s11 = smov (!%p1262_p13), 0  }
 0x138   : > { %s1551_s12 = smov (!%p1262_p13), 0  }
 0x13c LB: >> { %v956_v28 = vld [vmem:[%s1545_s10] sm:$0xf]  ;;  %s958_s13 = sadd.s32 1, %s1549_s11  ;;  %s950_s12 = sadd.s32 1, %s1553_s12   ;;  %s1553_s12 = sphi %s1551_s12, %s950_s12   ;;  %s1549_s11 = sphi %s1547_s11, %s1548_s11   ;;  %s1545_s10 = sphi %s1543_s10, %s963_s10   ;;  %s1541_s9 = sphi %s1539_s9, %s964_s9  }
 0x13d   : >> { %957 = vst [vmem:[%s1541_s9] sm:$0xf] %v956_v28  ;;  %p959_p0 = scmp.ge.s32.totalorder %s958_s13, %s1916_s5  ;;  %p949_p1 = scmp.ge.s32.totalorder %s950_s12, %s1916_s5 }
 0x13f   : >> { %s1951_s13 = smov (%p959_p0, %s958_s13), 0  ;;  %952 = sbr.rel (!%p949_p1) target bundleno = 316 (0x13c), region = 133 }
 0x140   : >> { %s1263_s14 = sshll.u32 %s1951_s13, 2  ;;  %s1548_s11 = smov %s1951_s13  }
 0x141   : >> { %s963_s10 = scalar_lea.vmem %s944_s7, %s1263_s14 [#allocation2]   ;;  %s964_s9 = scalar_lea.vmem %s946_s8, %s1263_s14  }
 0x144 PF: > { %p11_p2 = scmp.ge.s32.totalorder %s1596_s19, 176   ;;  %s1943_s15 = smov %s1517_s16 }
 0x145   : > { %s1944_s16 = smov %s1604_s22  ;;  %s1945_s17 = smov %s1596_s19 }
 0x146   :  { %13 = sbr.rel (!%p11_p2) target bundleno = 2 (0x2), region = 144 }

</bundles_post_ra>
